<compile_context>
chip_gen: v5e
topology: v5e:2x2
jax: 0.10.0
libtpu: 0.0.40
codegen_flags: <defaults>
</compile_context>

<pallas_src>
import jax
import jax.numpy as jnp
from jax.experimental import pallas as pl
from jax.experimental.pallas import tpu as pltpu

# Problem sizes implied by the original script.
D_IN, HIDDEN, D_OUT = 10, 32, 10

LANES = 128           # full lane width; everything is padded to this
# Parameter-slab layout (row starts are multiples of 8; zero-padded elsewhere).
ROW_W1 = 0                    # rows [0, 10)    : w1 (D_IN, HIDDEN) in lanes [0, 32)
ROW_B1 = 16                   # row  16         : b1 in lanes [0, 32)
ROW_W2 = 24                   # rows [24, 152)  : w2 (HIDDEN, D_OUT) in rows [24, 56), lanes [0, 10)
ROW_B2 = ROW_W2 + LANES       # row  152        : b2 in lanes [0, 10)
SLAB_ROWS = 160               # multiple of 8 (f32 sublane); 160*128*4 B = 80 KiB
SLAB_COLS = LANES


def pack_params(w1, b1, w2, b2):
    """Pack all parameters into one zero-padded (160, 128) f32 slab (done once).

    Zero padding is load-bearing: pad lanes of b1 give ReLU(0)=0 hidden lanes,
    and pad rows/lanes of w2 contribute exactly 0 to the second matmul.
    """
    slab = jnp.zeros((SLAB_ROWS, SLAB_COLS), jnp.float32)
    slab = slab.at[ROW_W1:ROW_W1 + D_IN, :HIDDEN].set(w1)
    slab = slab.at[ROW_B1, :HIDDEN].set(b1)
    slab = slab.at[ROW_W2:ROW_W2 + HIDDEN, :D_OUT].set(w2)
    slab = slab.at[ROW_B2, :D_OUT].set(b2)
    return slab


def mlp_kernel(x_ref, p_ref, o_ref):
    # Full-128-lane static slices of the resident parameter slab.
    w1 = p_ref[ROW_W1:ROW_W1 + D_IN, :]       # (10, 128)   lanes >= 32 are zero
    b1 = p_ref[ROW_B1:ROW_B1 + 1, :]          # (1, 128)    lanes >= 32 are zero
    w2 = p_ref[ROW_W2:ROW_W2 + LANES, :]      # (128, 128)  rows >= 32 / lanes >= 10 zero
    b2 = p_ref[ROW_B2:ROW_B2 + 1, :]          # (1, 128)    lanes >= 10 are zero

    # Linear(10 -> 32) + ReLU, computed lane-dense as (B, 128); pad lanes stay 0.
    h = jnp.dot(x_ref[...], w1, preferred_element_type=jnp.float32) + b1
    h = jnp.maximum(h, 0.0)
    # Linear(32 -> 10), lane-dense (B, 128); lanes >= 10 are exactly 0.
    y = jnp.dot(h, w2, preferred_element_type=jnp.float32) + b2
    o_ref[...] = y.astype(o_ref.dtype)        # unmasked full-lane store


def my_sequential_forward(x, param_slab):
    """x: (B, D_IN) f32; param_slab: (SLAB_ROWS, SLAB_COLS) f32 from pack_params."""
    B = x.shape[0]
    cost = pl.CostEstimate(
        flops=2 * B * (D_IN * HIDDEN + HIDDEN * D_OUT),
        transcendentals=0,
        bytes_accessed=4 * (x.size + param_slab.size + B * SLAB_COLS),
    )
    # Single program, no grid: whole-array VMEM specs (no pipeline windowing).
    y_padded = pl.pallas_call(
        mlp_kernel,
        out_shape=jax.ShapeDtypeStruct((B, SLAB_COLS), x.dtype),
        in_specs=[
            pl.BlockSpec(memory_space=pltpu.MemorySpace.VMEM),
            pl.BlockSpec(memory_space=pltpu.MemorySpace.VMEM),
        ],
        out_specs=pl.BlockSpec(memory_space=pltpu.MemorySpace.VMEM),
        cost_estimate=cost,
    )(x, param_slab)
    # Drop the zero pad lanes; under jit the consumer fuses this slice.
    return y_padded[:, :D_OUT]


# Jitted at the call site so the pallas custom call lives inside one XLA graph.
my_sequential_forward_jit = jax.jit(my_sequential_forward)


def init_params(key, d_in=D_IN, hidden=HIDDEN, d_out=D_OUT):
    """Deterministic PyTorch-style (uniform ±1/sqrt(fan_in)) init."""
    k1, k2, k3, k4 = jax.random.split(key, 4)
    bound1 = 1.0 / jnp.sqrt(d_in)
    bound2 = 1.0 / jnp.sqrt(hidden)
    # Stored (in, out) — already transposed vs. PyTorch's (out, in).
    w1 = jax.random.uniform(k1, (d_in, hidden), jnp.float32, -bound1, bound1)
    b1 = jax.random.uniform(k2, (hidden,), jnp.float32, -bound1, bound1)
    w2 = jax.random.uniform(k3, (hidden, d_out), jnp.float32, -bound2, bound2)
    b2 = jax.random.uniform(k4, (d_out,), jnp.float32, -bound2, bound2)
    return w1, b1, w2, b2


if __name__ == "__main__":
    key = jax.random.PRNGKey(0)
    kx, kp = jax.random.split(key)

    # X = torch.rand((10, 10)) analogue
    x = jax.random.uniform(kx, (10, 10), jnp.float32)
    w1, b1, w2, b2 = init_params(kp)

    # Pack parameters once (analogous to loading weights).
    param_slab = pack_params(w1, b1, w2, b2)

    out = my_sequential_forward_jit(x, param_slab)
    out = jax.block_until_ready(out)

    # Pure-JAX reference check of the same sequential forward.
    ref = jnp.maximum(x @ w1 + b1, 0.0) @ w2 + b2
    assert out.shape == (10, 10)
    assert jnp.allclose(out, ref, atol=1e-5, rtol=1e-5)

    print("KERNEL_OK")
</pallas_src>

<mosaic_0001>
module attributes {stable_mosaic.version = 11 : i64} {
  func.func @mlp_kernel(%arg0: memref<10x10xf32, #tpu.memory_space<vmem>>, %arg1: memref<160x128xf32, #tpu.memory_space<vmem>>, %arg2: memref<10x128xf32, #tpu.memory_space<vmem>>) attributes {dimension_semantics = [], scalar_prefetch = 0 : i64, scratch_operands = 0 : i64, tpu.core_type = #tpu.core_type<tc>} {
    %c0 = arith.constant 0 : index
    %c0_0 = arith.constant 0 : index
    %0 = vector.load %arg1[%c0, %c0_0] : memref<160x128xf32, #tpu.memory_space<vmem>>, vector<10x128xf32>
    %c16 = arith.constant 16 : index
    %c0_1 = arith.constant 0 : index
    %1 = vector.load %arg1[%c16, %c0_1] : memref<160x128xf32, #tpu.memory_space<vmem>>, vector<1x128xf32>
    %c24 = arith.constant 24 : index
    %c0_2 = arith.constant 0 : index
    %2 = vector.load %arg1[%c24, %c0_2] : memref<160x128xf32, #tpu.memory_space<vmem>>, vector<128x128xf32>
    %c152 = arith.constant 152 : index
    %c0_3 = arith.constant 0 : index
    %3 = vector.load %arg1[%c152, %c0_3] : memref<160x128xf32, #tpu.memory_space<vmem>>, vector<1x128xf32>
    %c0_4 = arith.constant 0 : index
    %c0_5 = arith.constant 0 : index
    %4 = vector.load %arg0[%c0_4, %c0_5] : memref<10x10xf32, #tpu.memory_space<vmem>>, vector<10x10xf32>
    %cst = arith.constant dense<0.000000e+00> : vector<10x128xf32>
    %5 = tpu.matmul %4, %0, %cst {dimension_numbers = #tpu.dot_dimension_numbers<[1], [0], [0], [1], [0, 0, 1, 1], [], []>} : vector<10x10xf32>, vector<10x128xf32>, vector<10x128xf32> -> vector<10x128xf32>
    %6 = vector.broadcast %1 : vector<1x128xf32> to vector<10x128xf32>
    %7 = arith.addf %5, %6 : vector<10x128xf32>
    %cst_6 = arith.constant 0.000000e+00 : f32
    %8 = vector.broadcast %cst_6 : f32 to vector<10x128xf32>
    %9 = arith.maximumf %7, %8 : vector<10x128xf32>
    %cst_7 = arith.constant dense<0.000000e+00> : vector<10x128xf32>
    %10 = tpu.matmul %9, %2, %cst_7 {dimension_numbers = #tpu.dot_dimension_numbers<[1], [0], [0], [1], [0, 0, 1, 1], [], []>} : vector<10x128xf32>, vector<128x128xf32>, vector<10x128xf32> -> vector<10x128xf32>
    %11 = vector.broadcast %3 : vector<1x128xf32> to vector<10x128xf32>
    %12 = arith.addf %10, %11 : vector<10x128xf32>
    %c0_8 = arith.constant 0 : index
    %c0_9 = arith.constant 0 : index
    %13 = vector.load %arg2[%c0_8, %c0_9] : memref<10x128xf32, #tpu.memory_space<vmem>>, vector<10x128xf32>
    tpu.vector_store %arg2[%c0_8, %c0_9], %12 {strides = array<i32>} : memref<10x128xf32, #tpu.memory_space<vmem>>, vector<10x128xf32>,
    return
  }
}

</mosaic_0001>

<bundles_post_ra>
// kernel: my_sequential_forward.1
= control target key start
LH: loop header
LB: loop body
LE: loop exit
PB: predicated region body
PF: predicated region fallthrough
CT: control target
= control target key end

     0   :  { %7 = vsyncpa [#allocation3], 0  ;;  %s293_s0 = inlined_call_operand.hbm [shape: f32[10,10], index: 0, kind: input, shape index: {}]   ;;  %s294_s1 = inlined_call_operand.hbm [shape: f32[160,128], index: 1, kind: input, shape index: {}]   ;;  %s295_s2 = inlined_call_operand.hbm [shape: f32[10,128], index: 2, kind: output, shape index: {}]  }
   0x1   :  { %8 = vsyncpa [#allocation6], 0 }
   0x2   :  { %9 = vsyncpa [#allocation4], 0  ;;  %s14_s11 = sshll.u32 %s293_s0, 4  ;;  %s253_s12 = smov [#allocation2]   ;;  %s15_s11 = int_to_ptr.hbm [resolvable:$true] %s14_s11 }
   0x3   :  { %s16_s13 = sshll.u32 %s253_s12, 4  ;;  %s27_s16 = sshll.u32 %s294_s1, 4  ;;  %s17_s13 = int_to_ptr.vmem [resolvable:$true] %s16_s13  ;;  %s28_s16 = int_to_ptr.hbm [resolvable:$true] %s27_s16 }
   0x4   :  { %s254_s17 = smov 128   ;;  %s255_s18 = smov 8  }
   0x5   :  { %22 = dma.hbm_to_vmem [thread:$0]  %s15_s11, 256, %s17_s13, [#allocation3], %s254_s17, %s254_s17, %s255_s18  }
   0x6   :  { %s256_s19 = smov [#allocation5]  }
   0x7   :  { %s29_s20 = sshll.u32 %s256_s19, 4  ;;  %s30_s20 = int_to_ptr.vmem [resolvable:$true] %s29_s20 }
   0x8   :  { %35 = dma.hbm_to_vmem [thread:$0]  %s28_s16, 2560, %s30_s20, [#allocation6], %s254_s17, %s254_s17, %s255_s18  }
   0x9   :  { %247 = dma.done.wait [#allocation3], 256  }
   0xa   :  { %248 = vsyncadd [#allocation3], 4294967040 }
   0xb   :  { %249 = dma.done.wait [#allocation6], 2560  }
   0xc   :  { %250 = vsyncadd [#allocation6], 4294964736  ;;  %vm74_vm0 = vcmask 1041408   ;;  %v45_v0 = vld [vmem:[#allocation5 + $0x8] sm:$0x3]  ;;  %v44_v1 = vld [vmem:[#allocation5] sm:$0xff] }
   0xd   :  { %149 = vmatpush.msk.msra.mxu0 %vm74_vm0, %v45_v0  ;;  %v64_v2 = vld [vmem:[#allocation2] sm:$0xff]  ;;  %vm67_vm1 = vcmask 80896   ;;  %v61_v4 = vld [vmem:[#allocation5 + $0x88] sm:$0xff]  ;;  %v60_v5 = vld [vmem:[#allocation5 + $0x80] sm:$0xff]  ;;  %s257_s0 = smov [#allocation7]   ;;  %s135_s23 = sshll.u32 %s295_s2, 4  ;;  %s136_s23 = int_to_ptr.hbm [resolvable:$true] %s135_s23 }
   0xe   :  { %v62_v3 = vld [vmem:[#allocation5 + $0x90] sm:$0xff]  ;;  %v59_v6 = vld [vmem:[#allocation5 + $0x78] sm:$0xff]  ;;  %v57_v9 = vld [vmem:[#allocation5 + $0x68] sm:$0xff]  ;;  %s133_s1 = sshll.u32 %s257_s0, 4  ;;  %s134_s1 = int_to_ptr.vmem [resolvable:$true] %s133_s1 }
   0xf   :  { %104 = vmatpush.msra.mxu1 %v62_v3  ;;  %152 = vmatpush.msra.mxu2 %v62_v3  ;;  %v58_v7 = vld [vmem:[#allocation5 + $0x70] sm:$0xff]  ;;  %v65_v8 = vld [vmem:[#allocation2 + $0x8] sm:$0x3]  ;;  %v56_v10 = vld [vmem:[#allocation5 + $0x60] sm:$0xff] }
  0x10   :  { %93 = vmatpush.msra.mxu0 %v44_v1  ;;  %v55_v11 = vld [vmem:[#allocation5 + $0x58] sm:$0xff]  ;;  %v54_v12 = vld [vmem:[#allocation5 + $0x50] sm:$0xff]  ;;  %v53_v13 = vld [vmem:[#allocation5 + $0x48] sm:$0xff] }
  0x11   :  { %150 = vmatmul.msk.f32.vlgmr.msra.gmra.mxu0 %vm67_vm1, %v64_v2  ;;  %105 = vmatpush.msra.mxu1 %v61_v4  ;;  %v52_v14 = vld [vmem:[#allocation5 + $0x40] sm:$0xff]  ;;  %v51_v15 = vld [vmem:[#allocation5 + $0x38] sm:$0xff]  ;;  %v50_v16 = vld [vmem:[#allocation5 + $0x30] sm:$0xff] }
  0x12   :  { %153 = vmatpush.msra.mxu2 %v61_v4  ;;  %v49_v17 = vld [vmem:[#allocation5 + $0x28] sm:$0xff]  ;;  %v48_v18 = vld [vmem:[#allocation5 + $0x20] sm:$0xff]  ;;  %v47_v19 = vld [vmem:[#allocation5 + $0x18] sm:$0xff] }
  0x13   :  { %106 = vmatpush.msra.mxu1 %v60_v5  ;;  %v173_v20 = vld [vmem:[#allocation5 + $0x10] ss:$0 sm:$0xff]  ;;  %v174_v27 = vld [vmem:[#allocation5 + $0x98] ss:$0 sm:$0xff] }
  0x14   :  { %154 = vmatpush.msra.mxu2 %v60_v5 }
  0x15   :  { %107 = vmatpush.msra.mxu1 %v59_v6 }
  0x16   :  { %155 = vmatpush.msra.mxu2 %v59_v6 }
  0x17   :  { %108 = vmatpush.msra.mxu1 %v58_v7 }
  0x18   :  { %156 = vmatpush.msra.mxu2 %v58_v7 }
  0x19   :  { %151 = vmatmul.msk.f32.gmra.mxu0 %vm67_vm1, %v65_v8  ;;  %109 = vmatpush.msra.mxu1 %v57_v9 }
  0x1a   :  { %157 = vmatpush.msra.mxu2 %v57_v9 }
  0x1b   :  { %110 = vmatpush.msra.mxu1 %v56_v10 }
  0x1c   :  { %158 = vmatpush.msra.mxu2 %v56_v10 }
  0x1d   :  { %111 = vmatpush.msra.mxu1 %v55_v11 }
  0x1e   :  { %159 = vmatpush.msra.mxu2 %v55_v11 }
  0x1f   :  { %112 = vmatpush.msra.mxu1 %v54_v12 }
  0x20   :  { %160 = vmatpush.msra.mxu2 %v54_v12 }
  0x21   :  { %113 = vmatpush.msra.mxu1 %v53_v13 }
  0x22   :  { %161 = vmatpush.msra.mxu2 %v53_v13 }
  0x23   :  { %114 = vmatpush.msra.mxu1 %v52_v14 }
  0x24   :  { %162 = vmatpush.msra.mxu2 %v52_v14 }
  0x25   :  { %115 = vmatpush.msra.mxu1 %v51_v15 }
  0x26   :  { %163 = vmatpush.msra.mxu2 %v51_v15 }
  0x27   :  { %116 = vmatpush.msra.mxu1 %v50_v16 }
  0x28   :  { %164 = vmatpush.msra.mxu2 %v50_v16 }
  0x29   :  { %117 = vmatpush.msra.mxu1 %v49_v17 }
  0x2a   :  { %165 = vmatpush.msra.mxu2 %v49_v17 }
  0x2b   :  { %118 = vmatpush.msra.mxu1 %v48_v18 }
  0x2c   :  { %166 = vmatpush.msra.mxu2 %v48_v18 }
  0x2d   :  { %119 = vmatpush.msra.mxu1 %v47_v19 }
  0x2e   :  { %167 = vmatpush.msra.mxu2 %v47_v19 }
  0x8e   :  { %v95_v21 = vpop.f32.mrf.mxu0 }
  0x8f   :  { %v96_v22 = vadd.f32 %v173_v20, %v95_v21 }
  0x91   :  { %v101_v23 = vmax.f32 %v96_v22, 0.0 }
  0x93   :  { %120 = vmatmul.f32.vlgmr.msra.gmra.mxu1 %v101_v23 }
  0x96   :  { %v98_v24 = vpop.f32.mrf.mxu0 }
  0x97   :  { %v99_v25 = vadd.f32 %v173_v20, %v98_v24 }
  0x99   :  { %v102_v26 = vmax.f32 %v99_v25, 0.0 }
  0x9b   :  { %123 = vmatmul.f32.vlgmr.msra.gmra.mxu2 %v102_v26 }
 0x110   :  { %v121_v28 = vpop.f32.mrf.mxu1 }
 0x111   :  { %v122_v29 = vadd.f32 %v174_v27, %v121_v28 }
 0x113   :  { %127 = vst [vmem:[#allocation7] sm:$0xff] %v122_v29 }
 0x11e   :  { %v124_v30 = vpop.f32.mrf.mxu2 }
 0x11f   :  { %v125_v31 = vadd.f32 %v174_v27, %v124_v30 }
 0x121   :  { %128 = vst [vmem:[#allocation7 + $0x8] sm:$0x3] %v125_v31 }
 0x122   :  { %141 = dma.vmem_to_hbm [thread:$0]  %s134_s1, 256, %s136_s23, [#allocation4], %s254_s17, %s254_s17, %s255_s18  }
 0x123   :  { %251 = dma.done.wait [#allocation4], 256  }
 0x124   :  { %252 = vsyncadd [#allocation4], 4294967040 }
 0x125   :  { %146 = vsyncpa [#allocation3], 1 }
 0x126   :  { %147 = vsyncpa [#allocation6], 1 }
 0x127   :  { %148 = vsyncpa [#allocation4], 1 }

</bundles_post_ra>
